<compile_context>
chip_gen: v7x
topology: tpu7x:2x2x1
jax: 0.10.0
libtpu: 0.0.40
codegen_flags: <defaults>
</compile_context>

<pallas_src>
import numpy as np
import jax
import jax.numpy as jnp
from jax import lax
from jax.experimental import pallas as pl
from jax.experimental.pallas import tpu as pltpu

_TC = 128  # epilogue chunk: tokens per sub-block (one lane-width)


def _tagging_kernel(x_ref, w_ref, b_ref, labels_ref, mask_ref,
                    preds_ref, loss_ref):
    """Processes one (TILE_N, H) tile of tokens, chunked in 128-token strips.

    x_ref:      (T, H)   f32/bf16  activation tile (cast to bf16 for the MXU)
    w_ref:      (H, Lp)  bf16      resident classifier weight (Lp = padded L)
    b_ref:      (1, Lp)  f32       resident bias; padded classes hold -1e30
    labels_ref: (1, T)   int32     lane-dense labels (-100 = ignore_index)
    mask_ref:   (1, T)   int32     lane-dense attention mask
    preds_ref:  (1, T)   int32     argmax per token
    loss_ref:   (1, T)   f32       masked per-token CE (0 where inactive)
    """
    t = x_ref.shape[0]          # static; wrapper guarantees t % _TC == 0
    lp = w_ref.shape[1]
    nc = t // _TC

    bias = b_ref[...]                                              # (1, Lp)
    # Class-index iota shared by every chunk. Hoisted: JAX does not CSE
    # broadcast_in_dim, and per-chunk regeneration is pure VALU filler.
    cls_idx = lax.broadcasted_iota(jnp.int32, (lp, _TC), 0)        # (Lp, TC)

    # Statically unrolled chunk loop: bounds per-chunk live values (logits,
    # exp, compares) to a fraction of the vreg file and keeps every output
    # store a static, lane-aligned (1, 128) segment (unmasked vst).
    for c in range(nc):
        off = c * _TC
        # MXU matmul in bf16 with f32 accumulation; bias add in f32.
        x_c = x_ref[off:off + _TC, :].astype(jnp.bfloat16)         # (TC, H)
        logits = jnp.dot(x_c, w_ref[...],
                         preferred_element_type=jnp.float32) + bias  # (TC, Lp)

        # One aligned (TC, Lp) transpose so per-token quantities live in the
        # lane dim: reductions are over sublanes, stores are lane-dense.
        lt = logits.T                                              # (Lp, TC)
        labels_c = labels_ref[:, off:off + _TC]                    # (1, TC)
        mask_c = mask_ref[:, off:off + _TC]                        # (1, TC)

        # log-softmax cross-entropy per token. Padded classes have -1e30
        # logits: never the max, contribute exp(...)==0 to the sum.
        m = jnp.max(lt, axis=0, keepdims=True)                     # (1, TC)
        lse = jnp.log(jnp.sum(jnp.exp(lt - m), axis=0, keepdims=True)) + m
        picked = jnp.sum(jnp.where(cls_idx == labels_c, lt, 0.0),
                         axis=0, keepdims=True)                    # (1, TC)
        tok_loss = lse - picked

        # active token: attention_mask == 1 and label != ignore_index(-100)
        active = jnp.logical_and(mask_c == 1, labels_c != -100)
        loss_ref[:, off:off + _TC] = jnp.where(active, tok_loss, 0.0)

        # first-max argmax, reusing the max `m` already computed for the lse.
        preds_ref[:, off:off + _TC] = jnp.min(
            jnp.where(lt == m, cls_idx, lp), axis=0,
            keepdims=True).astype(jnp.int32)


def tagging_head(hidden, w, b, labels, attention_mask, *, tile_n=512):
    """hidden: (B,S,H) f32/bf16; w: (H,L); b: (L,); labels/mask: (B,S).

    Returns (preds_flat (B*S,) int32, mean masked cross-entropy loss).
    Loss is NaN if no token is active (torch CrossEntropyLoss parity).
    tile_n: 512 is a good default everywhere; 1024 is fine on v5e/v6e.
    """
    B, S, H = hidden.shape
    L = w.shape[1]
    N = B * S

    lp = 128 * pl.cdiv(L, 128)          # lane-pad classes (never beyond 128*k)

    # Token-tile sizing: multiples of the 128-token epilogue chunk; when the
    # input is big enough, cap so nt >= 2 (keeps both v7x TensorCores busy).
    tile_n = max(_TC, _TC * (tile_n // _TC))
    if N > _TC:
        tile_n = min(tile_n, _TC * pl.cdiv(pl.cdiv(N, 2), _TC))
    else:
        tile_n = _TC
    nt = pl.cdiv(N, tile_n)
    n_pad = nt * tile_n

    # x: NO pad, NO cast - the kernel streams the (N, H) activations directly
    # (partial final block). Tail tokens are neutralized by the -100/0 label/
    # mask padding below and by slicing preds[:N].
    x = hidden.reshape(N, H)
    w_p = jnp.pad(w.astype(jnp.bfloat16), ((0, 0), (0, lp - L)))
    b_p = jnp.pad(b.astype(jnp.float32).reshape(1, L), ((0, 0), (0, lp - L)),
                  constant_values=-1e30)   # padded classes never win max/lse

    labels2 = jnp.pad(labels.reshape(N).astype(jnp.int32), (0, n_pad - N),
                      constant_values=-100).reshape(nt, tile_n)
    mask2 = jnp.pad(attention_mask.reshape(N).astype(jnp.int32),
                    (0, n_pad - N)).reshape(nt, tile_n)

    def make_specs(tuned):
        def spec(shape, index_map, buffers=None):
            if tuned and buffers is not None:
                return pl.BlockSpec(shape, index_map,
                                    pipeline_mode=pl.Buffered(buffers))
            return pl.BlockSpec(shape, index_map)
        row = spec((1, tile_n), lambda i: (i, 0))
        in_specs = [
            spec((tile_n, H), lambda i: (i, 0), buffers=3),  # streamed x tiles
            spec((H, lp), lambda i: (0, 0), buffers=1),      # resident weight
            spec((1, lp), lambda i: (0, 0), buffers=1),      # resident bias
            row,                                             # labels
            row,                                             # attention mask
        ]
        return in_specs, (row, row)

    def run(tuned):
        in_specs, out_specs = make_specs(tuned)
        outs = pl.pallas_call(
            _tagging_kernel,
            grid=(nt,),
            in_specs=in_specs,
            out_specs=out_specs,
            out_shape=(
                jax.ShapeDtypeStruct((nt, tile_n), jnp.int32),    # preds
                jax.ShapeDtypeStruct((nt, tile_n), jnp.float32),  # masked CE
            ),
            compiler_params=pltpu.CompilerParams(
                dimension_semantics=("parallel",),
                vmem_limit_bytes=32 * 1024 * 1024,
            ),
        )(x, w_p, b_p, labels2, mask2)
        jax.block_until_ready(outs)   # surface compile errors inside fallback
        return outs

    if hasattr(pl, "Buffered"):
        try:
            preds, loss_part = run(True)
        except Exception:
            # pipeline_mode buffer tuning unsupported -> default pipelining.
            preds, loss_part = run(False)
    else:
        preds, loss_part = run(False)

    # Tiny XLA finalize; the active-token denominator comes straight from the
    # inputs (no count output stream from the kernel). NaN if nothing active.
    active = jnp.logical_and(attention_mask.reshape(N) == 1,
                             labels.reshape(N) != -100)
    loss = jnp.sum(loss_part) / jnp.sum(active.astype(jnp.float32))
    preds_flat = preds.reshape(n_pad)[:N]
    return preds_flat, loss


def tagging_head_forward(params, hidden_states, inputs):
    """Mirrors TaggingHead.forward -> {'loss', 'preds', 'labels'}.

    `hidden_states` stands in for the (shared) encoder output; dropout is
    identity (eval mode).
    """
    preds_flat, loss = tagging_head(hidden_states, params["w"], params["b"],
                                    inputs["labels"], inputs["attention_mask"])

    # Data-dependent boolean gather (dynamic output shapes) stays host-side.
    # TODO(synk): no Pallas/XLA equivalent of dynamic-shape boolean indexing.
    attn = np.asarray(inputs["attention_mask"]).reshape(-1) == 1
    labels = np.asarray(inputs["labels"]).reshape(-1)
    active_labels = np.where(attn, labels, -100)
    non_padded = active_labels != -100
    active_preds_mask = np.logical_and(attn, non_padded)
    return {
        "loss": loss,
        "preds": np.asarray(preds_flat)[active_preds_mask],
        "labels": active_labels[non_padded],
    }


if __name__ == "__main__":
    B, S, H, L = 2, 8, 32, 8   # batch, seq, hidden, num_labels

    key = jax.random.PRNGKey(0)
    k_h, k_lab, k_w = jax.random.split(key, 3)

    hidden_states = jax.random.normal(k_h, (B, S, H), jnp.float32)
    tag_labels = jax.random.randint(k_lab, (B, S), 0, L).astype(jnp.int32)
    # last two tokens of each sequence are padding
    attention_mask = jnp.concatenate(
        [jnp.ones((B, S - 2), jnp.int32), jnp.zeros((B, 2), jnp.int32)], axis=1)
    tag_labels = jnp.where(attention_mask == 1, tag_labels, -100)

    params = {
        "w": jax.random.normal(k_w, (H, L), jnp.float32) * 0.02,
        "b": jnp.zeros((L,), jnp.float32),
    }
    inputs = {"labels": tag_labels, "attention_mask": attention_mask}

    out = tagging_head_forward(params, hidden_states, inputs)
    jax.block_until_ready(out["loss"])

    # ---- pure-JAX reference (f32 math on bf16-rounded matmul operands) ----
    xb = hidden_states.reshape(-1, H).astype(jnp.bfloat16).astype(jnp.float32)
    wb = params["w"].astype(jnp.bfloat16).astype(jnp.float32)
    ref_logits = xb @ wb + params["b"]
    labels_flat = tag_labels.reshape(-1)
    active = (attention_mask.reshape(-1) == 1) & (labels_flat != -100)
    lse = jax.nn.logsumexp(ref_logits, axis=-1)
    picked = jnp.take_along_axis(
        ref_logits, jnp.clip(labels_flat, 0, L - 1).reshape(-1, 1), axis=-1)[:, 0]
    ref_loss = jnp.sum(jnp.where(active, lse - picked, 0.0)) / jnp.sum(active)
    ref_preds = jnp.argmax(ref_logits, axis=-1)

    active_np = np.asarray(active)
    assert np.allclose(float(out["loss"]), float(ref_loss), rtol=1e-3, atol=1e-3), \
        (float(out["loss"]), float(ref_loss))
    assert np.array_equal(np.asarray(out["preds"]), np.asarray(ref_preds)[active_np])
    assert np.array_equal(np.asarray(out["labels"]),
                          np.asarray(labels_flat)[active_np])
    assert out["preds"].shape == out["labels"].shape

    print("KERNEL_OK")
</pallas_src>

<mosaic_0001>
module attributes {stable_mosaic.version = 11 : i64} {
  func.func @_tagging_kernel(%arg0: i32, %arg1: memref<128x32xf32, #tpu.memory_space<vmem>>, %arg2: memref<32x128xbf16, #tpu.memory_space<vmem>>, %arg3: memref<1x128xf32, #tpu.memory_space<vmem>>, %arg4: memref<1x128xi32, #tpu.memory_space<vmem>>, %arg5: memref<1x128xi32, #tpu.memory_space<vmem>>, %arg6: memref<1x128xi32, #tpu.memory_space<vmem>>, %arg7: memref<1x128xf32, #tpu.memory_space<vmem>>) attributes {dimension_semantics = [#tpu.dimension_semantics<parallel>], iteration_bounds = array<i64: 1>, scalar_prefetch = 0 : i64, scratch_operands = 0 : i64, tpu.core_type = #tpu.core_type<tc>, window_params = [{transform_indices = @transform_0, window_bounds = array<i64: 128, 32>}, {pipeline_mode = #tpu.pipeline_mode<synchronous>, transform_indices = @transform_1, window_bounds = array<i64: 32, 128>}, {pipeline_mode = #tpu.pipeline_mode<synchronous>, transform_indices = @transform_2, window_bounds = array<i64: 1, 128>}, {transform_indices = @transform_3, window_bounds = array<i64: 1, 128>}, {transform_indices = @transform_4, window_bounds = array<i64: 1, 128>}, {transform_indices = @transform_5, window_bounds = array<i64: 1, 128>}, {transform_indices = @transform_6, window_bounds = array<i64: 1, 128>}]} {
    %c0 = arith.constant 0 : index
    %c0_0 = arith.constant 0 : index
    %0 = vector.load %arg3[%c0, %c0_0] : memref<1x128xf32, #tpu.memory_space<vmem>>, vector<1x128xf32>
    %1 = tpu.iota {dimensions = array<i32: 0>} : vector<128x128xi32>
    %c0_1 = arith.constant 0 : index
    %c0_2 = arith.constant 0 : index
    %2 = vector.load %arg1[%c0_1, %c0_2] : memref<128x32xf32, #tpu.memory_space<vmem>>, vector<128x32xf32>
    %3 = arith.truncf %2 : vector<128x32xf32> to vector<128x32xbf16>
    %c0_3 = arith.constant 0 : index
    %c0_4 = arith.constant 0 : index
    %4 = vector.load %arg2[%c0_3, %c0_4] : memref<32x128xbf16, #tpu.memory_space<vmem>>, vector<32x128xbf16>
    %cst = arith.constant dense<0.000000e+00> : vector<128x128xf32>
    %5 = tpu.matmul %3, %4, %cst {dimension_numbers = #tpu.dot_dimension_numbers<[1], [0], [0], [1], [0, 0, 1, 1], [], []>} : vector<128x32xbf16>, vector<32x128xbf16>, vector<128x128xf32> -> vector<128x128xf32>
    %6 = vector.broadcast %0 : vector<1x128xf32> to vector<128x128xf32>
    %7 = arith.addf %5, %6 : vector<128x128xf32>
    %8 = tpu.transpose %7, [1, 0] : vector<128x128xf32> -> vector<128x128xf32>
    %c0_5 = arith.constant 0 : index
    %c0_6 = arith.constant 0 : index
    %9 = vector.load %arg4[%c0_5, %c0_6] : memref<1x128xi32, #tpu.memory_space<vmem>>, vector<1x128xi32>
    %c0_7 = arith.constant 0 : index
    %c0_8 = arith.constant 0 : index
    %10 = vector.load %arg5[%c0_7, %c0_8] : memref<1x128xi32, #tpu.memory_space<vmem>>, vector<1x128xi32>
    %cst_9 = arith.constant dense<0xFF800000> : vector<128xf32>
    %11 = vector.multi_reduction <maximumf>, %8, %cst_9 [0] : vector<128x128xf32> to vector<128xf32>
    %12 = vector.shape_cast %11 : vector<128xf32> to vector<1x128xf32>
    %13 = vector.broadcast %12 : vector<1x128xf32> to vector<128x128xf32>
    %14 = arith.subf %8, %13 : vector<128x128xf32>
    %15 = math.exp %14 : vector<128x128xf32>
    %cst_10 = arith.constant dense<0.000000e+00> : vector<128xf32>
    %16 = vector.multi_reduction <add>, %15, %cst_10 [0] : vector<128x128xf32> to vector<128xf32>
    %17 = vector.shape_cast %16 : vector<128xf32> to vector<1x128xf32>
    %18 = math.log %17 : vector<1x128xf32>
    %19 = arith.addf %18, %12 : vector<1x128xf32>
    %20 = vector.broadcast %9 : vector<1x128xi32> to vector<128x128xi32>
    %21 = arith.cmpi eq, %1, %20 : vector<128x128xi32>
    %cst_11 = arith.constant 0.000000e+00 : f32
    %22 = vector.broadcast %cst_11 : f32 to vector<128x128xf32>
    %23 = arith.select %21, %8, %22 : vector<128x128xi1>, vector<128x128xf32>
    %cst_12 = arith.constant dense<0.000000e+00> : vector<128xf32>
    %24 = vector.multi_reduction <add>, %23, %cst_12 [0] : vector<128x128xf32> to vector<128xf32>
    %25 = vector.shape_cast %24 : vector<128xf32> to vector<1x128xf32>
    %26 = arith.subf %19, %25 : vector<1x128xf32>
    %c1_i32 = arith.constant 1 : i32
    %27 = vector.broadcast %c1_i32 : i32 to vector<1x128xi32>
    %28 = arith.cmpi eq, %10, %27 : vector<1x128xi32>
    %c-100_i32 = arith.constant -100 : i32
    %29 = vector.broadcast %c-100_i32 : i32 to vector<1x128xi32>
    %30 = arith.cmpi ne, %9, %29 : vector<1x128xi32>
    %31 = arith.andi %28, %30 : vector<1x128xi1>
    %cst_13 = arith.constant 0.000000e+00 : f32
    %32 = vector.broadcast %cst_13 : f32 to vector<1x128xf32>
    %33 = arith.select %31, %26, %32 : vector<1x128xi1>, vector<1x128xf32>
    %c0_14 = arith.constant 0 : index
    %c0_15 = arith.constant 0 : index
    %34 = vector.load %arg7[%c0_14, %c0_15] : memref<1x128xf32, #tpu.memory_space<vmem>>, vector<1x128xf32>
    tpu.vector_store %arg7[%c0_14, %c0_15], %33 {strides = array<i32>} : memref<1x128xf32, #tpu.memory_space<vmem>>, vector<1x128xf32>,
    %35 = vector.broadcast %12 : vector<1x128xf32> to vector<128x128xf32>
    %36 = arith.cmpf oeq, %8, %35 : vector<128x128xf32>
    %c128_i32 = arith.constant 128 : i32
    %37 = vector.broadcast %c128_i32 : i32 to vector<128x128xi32>
    %38 = arith.select %36, %1, %37 : vector<128x128xi1>, vector<128x128xi32>
    %cst_16 = arith.constant dense<2147483647> : vector<128xi32>
    %39 = vector.multi_reduction <minsi>, %38, %cst_16 [0] : vector<128x128xi32> to vector<128xi32>
    %40 = vector.shape_cast %39 : vector<128xi32> to vector<1x128xi32>
    %c0_17 = arith.constant 0 : index
    %c0_18 = arith.constant 0 : index
    %41 = vector.load %arg6[%c0_17, %c0_18] : memref<1x128xi32, #tpu.memory_space<vmem>>, vector<1x128xi32>
    tpu.vector_store %arg6[%c0_17, %c0_18], %40 {strides = array<i32>} : memref<1x128xi32, #tpu.memory_space<vmem>>, vector<1x128xi32>,
    return
  }
  func.func @transform_0(%arg0: i32) -> (i32, i32) {
    %c0_i32 = arith.constant 0 : i32
    %c0_i32_0 = arith.constant 0 : i32
    return %arg0, %c0_i32 : i32, i32
  }
  func.func @transform_1(%arg0: i32) -> (i32, i32) {
    %c0_i32 = arith.constant 0 : i32
    %c0_i32_0 = arith.constant 0 : i32
    %c0_i32_1 = arith.constant 0 : i32
    return %c0_i32, %c0_i32_0 : i32, i32
  }
  func.func @transform_2(%arg0: i32) -> (i32, i32) {
    %c0_i32 = arith.constant 0 : i32
    %c0_i32_0 = arith.constant 0 : i32
    %c0_i32_1 = arith.constant 0 : i32
    return %c0_i32, %c0_i32_0 : i32, i32
  }
  func.func @transform_3(%arg0: i32) -> (i32, i32) {
    %c0_i32 = arith.constant 0 : i32
    %c0_i32_0 = arith.constant 0 : i32
    return %arg0, %c0_i32 : i32, i32
  }
  func.func @transform_4(%arg0: i32) -> (i32, i32) {
    %c0_i32 = arith.constant 0 : i32
    %c0_i32_0 = arith.constant 0 : i32
    return %arg0, %c0_i32 : i32, i32
  }
  func.func @transform_5(%arg0: i32) -> (i32, i32) {
    %c0_i32 = arith.constant 0 : i32
    %c0_i32_0 = arith.constant 0 : i32
    return %arg0, %c0_i32 : i32, i32
  }
  func.func @transform_6(%arg0: i32) -> (i32, i32) {
    %c0_i32 = arith.constant 0 : i32
    %c0_i32_0 = arith.constant 0 : i32
    return %arg0, %c0_i32 : i32, i32
  }
}

</mosaic_0001>

<bundles_post_ra>
// kernel: tpu_custom_call.1
= control target key start
LH: loop header
LB: loop body
LE: loop exit
PB: predicated region body
PF: predicated region fallthrough
CT: control target
= control target key end

     0   :  { %12 = vsyncpa [#allocation3], 0  ;;  %s1124_s0 = inlined_call_operand.hbm [shape: f32[16,32], index: 0, kind: input, shape index: {}]   ;;  %s1125_s1 = inlined_call_operand.hbm [shape: bf16[32,128], index: 1, kind: input, shape index: {}]   ;;  %s1126_s2 = inlined_call_operand.vmem [shape: f32[1,128], index: 2, kind: input, shape index: {}]   ;;  %s1127_s3 = inlined_call_operand.vmem [shape: s32[1,128], index: 3, kind: input, shape index: {}]   ;;  %s1128_s4 = inlined_call_operand.vmem [shape: s32[1,128], index: 4, kind: input, shape index: {}]   ;;  %s1129_s5 = inlined_call_operand.hbm [shape: s32[1,128], index: 5, kind: output, shape index: {0}]   ;;  %s1130_s6 = inlined_call_operand.hbm [shape: f32[1,128], index: 6, kind: output, shape index: {1}]  }
   0x1   :  { %13 = vsyncpa [#allocation6], 0 }
   0x2   :  { %14 = vsyncpa [#allocation4], 0 }
   0x3   :  { %15 = vsyncpa [#allocation9], 0 }
   0x4   :  { %20 = vsyncadd [#allocation3], 1792  ;;  %s716_s21 = smov [#allocation2]   ;;  %s620_s25 = scalar_lea.hbm %s1124_s0, 256 }
   0x5   :  { %s21_s22 = sshll.u32 %s716_s21, 4  ;;  %p621_p0 = scmp.ne.s32.totalorder %s1124_s0, %s620_s25  ;;  %s22_s22 = int_to_ptr.vmem [resolvable:$true] %s21_s22 }
   0x6   :  { %p624_p1 = scmp.lt.u32.totalorder %s620_s25, %s1124_s0 }
   0x8   :  { %p626_p2 = pnand %p624_p1, %p621_p0 }
   0xa   :  { %629 = shalt.err (!%p626_p2)
}
   0xb   :  { %s630_s30 = scalar_lea.vmem %s22_s22, 256  ;;  %s634_s7 = scalar_lea.vmem %s22_s22, 2048 }
   0xc   :  { %p631_p3 = scmp.ne.s32.totalorder %s22_s22, %s630_s30  ;;  %p635_p4 = scmp.lt.s32.totalorder %s22_s22, %s22_s22 }
   0xd   :  { %p636_p5 = scmp.lt.s32.totalorder %s634_s7, %s630_s30 }
   0xf   :  { %p637_p6 = por %p636_p5, %p635_p4 }
  0x11   :  { %p638_p7 = pnand %p637_p6, %p631_p3 }
  0x13   :  { %641 = shalt.err (!%p638_p7)
}
  0x14   :  { %s717_s8 = smov 128   ;;  %s718_s9 = smov 8  }
  0x15   :  { %27 = dma.hbm_to_vmem [thread:$0]  %s1124_s0, 256, %s22_s22, [#allocation3], %s717_s8, %s717_s8, %s718_s9  }
  0x16   :  { %s719_s12 = smov [#allocation5]   ;;  %s642_s16 = scalar_lea.hbm %s1125_s1, 256 }
  0x17   :  { %s33_s13 = sshll.u32 %s719_s12, 4  ;;  %p643_p8 = scmp.ne.s32.totalorder %s1125_s1, %s642_s16  ;;  %s34_s13 = int_to_ptr.vmem [resolvable:$true] %s33_s13 }
  0x18   :  { %p646_p9 = scmp.lt.u32.totalorder %s642_s16, %s1125_s1 }
  0x1a   :  { %p648_p10 = pnand %p646_p9, %p643_p8 }
  0x1c   :  { %651 = shalt.err (!%p648_p10)
}
  0x1d   :  { %s652_s21 = scalar_lea.vmem %s34_s13, 256  ;;  %p657_p12 = scmp.lt.s32.totalorder %s34_s13, %s34_s13 }
  0x1e   :  { %p653_p11 = scmp.ne.s32.totalorder %s34_s13, %s652_s21  ;;  %p658_p13 = scmp.lt.s32.totalorder %s652_s21, %s652_s21 }
  0x20   :  { %p659_p0 = por %p658_p13, %p657_p12 }
  0x22   :  { %p660_p1 = pnand %p659_p0, %p653_p11 }
  0x24   :  { %663 = shalt.err (!%p660_p1)
}
  0x25   :  { %s720_s0 = smov 64   ;;  %s721_s22 = smov 4  }
  0x26   :  { %39 = dma.hbm_to_vmem [thread:$0]  %s1125_s1, 256, %s34_s13, [#allocation6], %s720_s0, %s720_s0, %s721_s22  }
  0x27   :  { %708 = dma.done.wait [#allocation3], 2048  }
  0x28   :  { %709 = vsyncadd [#allocation3], 4294965248 }
  0x29   :  { %710 = dma.done.wait [#allocation6], 256  }
  0x2a   :  { %711 = vsyncadd [#allocation6], 4294967040  ;;  %v584_v0 = vld [vmem:[#allocation5] sm:$0xff]   ;;  %v585_v1 = vld [vmem:[#allocation5 + $0x8] sm:$0xff]   ;;  %vm117_vm0 = vcmask 261120   ;;  %v54_v59 = vlaneseq }
  0x2b   :  { %552 = vmatprep.subr.bf16.mxu0 %v584_v0  ;;  %v71_v2 = vld [vmem:[#allocation2] sm:$0xff]  ;;  %v72_v3 = vld [vmem:[#allocation2 + $0x8] sm:$0xff]  ;;  %572 = vmatprep.subr.bf16.mxu1 %v584_v0  ;;  %v73_v5 = vld [vmem:[#allocation2 + $0x10] sm:$0xff] }
  0x2c   :  { %553 = vmatpush3.bf16.msra.mxu0 %v584_v0  ;;  %v87_v4 = vpack.c.bf16 %v72_v3, %v71_v2  ;;  %v74_v6 = vld [vmem:[#allocation2 + $0x18] sm:$0xff]  ;;  %574 = vmatpush3.bf16.msra.mxu1 %v584_v0  ;;  %v75_v7 = vld [vmem:[#allocation2 + $0x20] sm:$0xff]  ;;  %v76_v8 = vld [vmem:[#allocation2 + $0x28] sm:$0xff]  ;;  %v796_v61 = vshrl.u32 %v54_v59, 7 }
  0x2d   :  { %554 = vmatprep.subr.bf16.mxu0 %v585_v1  ;;  %573 = vmatprep.subr.bf16.mxu1 %v585_v1  ;;  %v79_v9 = vld [vmem:[#allocation2 + $0x40] sm:$0xff]  ;;  %v80_v10 = vld [vmem:[#allocation2 + $0x48] sm:$0xff]  ;;  %v81_v11 = vld [vmem:[#allocation2 + $0x50] sm:$0xff]  ;;  %v88_v13 = vpack.c.bf16 %v74_v6, %v73_v5  ;;  %v89_v18 = vpack.c.bf16 %v76_v8, %v75_v7 }
  0x2e   :  { %556 = vmatprep.mubr.msk.bf16.mxu0 %vm117_vm0, %v87_v4  ;;  %v82_v12 = vld [vmem:[#allocation2 + $0x58] sm:$0xff]  ;;  %v91_v14 = vpack.c.bf16 %v80_v10, %v79_v9  ;;  %v83_v16 = vld [vmem:[#allocation2 + $0x60] sm:$0xff]  ;;  %v84_v17 = vld [vmem:[#allocation2 + $0x68] sm:$0xff]  ;;  %v368_v63 = vsub.s32 0, %v796_v61  ;;  %v815_v4 = vadd.s32 16, %v796_v61  ;;  %v820_v5 = vadd.s32 24, %v796_v61 }
  0x2f   :  { %v92_v15 = vpack.c.bf16 %v82_v12, %v81_v11  ;;  %v93_v19 = vpack.c.bf16 %v84_v17, %v83_v16  ;;  %v77_v20 = vld [vmem:[#allocation2 + $0x30] sm:$0xff]  ;;  %v78_v21 = vld [vmem:[#allocation2 + $0x38] sm:$0xff]  ;;  %v531_v26 = vld [vmem:[%s1126_s2] ss:$0 sm:$0xff]  ;;  %v829_v7 = vadd.s32 32, %v796_v61  ;;  %v837_v10 = vadd.s32 40, %v796_v61 }
  0x30   :  { %555 = vmatpush3.bf16.msra.mxu0 %v585_v1  ;;  %575 = vmatpush3.bf16.msra.mxu1 %v585_v1  ;;  %v85_v22 = vld [vmem:[#allocation2 + $0x70] sm:$0xff]  ;;  %v86_v23 = vld [vmem:[#allocation2 + $0x78] sm:$0xff]  ;;  %v90_v24 = vpack.c.bf16 %v78_v21, %v77_v20  ;;  %v804_v0 = vld [vmem:[%s1127_s3] sm:$0x1]  ;;  %v807_v1 = vadd.s32 8, %v796_v61  ;;  %v855_v20 = vadd.s32 56, %v796_v61 }
  0x31   :  { %564 = vmatprep.mubr.msk.bf16.mxu1 %vm117_vm0, %v91_v14  ;;  %v94_v25 = vpack.c.bf16 %v86_v23, %v85_v22  ;;  %v812_v3 = vrot.slane %v804_v0, %v368_v63  ;;  %v844_v14 = vadd.s32 48, %v796_v61  ;;  %s722_s3 = smov [#allocation7]  }
  0x32   :  { %s507_s27 = sshll.u32 %s722_s3, 4  ;;  %s508_s27 = int_to_ptr.vmem [resolvable:$true] %s507_s27 }
  0x33   :  { %557 = vmatmul.mubr.msk.bf16.vlgmr.msra.gmra.mrb[0].mxu0 %vm117_vm0, %v88_v13  ;;  %565 = vmatmul.mubr.msk.bf16.vlgmr.msra.gmra.mrb[0].mxu1 %vm117_vm0, %v92_v15  ;;  %vm371_vm1 = vcmp.eq.s32.totalorder %v807_v1, %v812_v3  ;;  %vm370_vm2 = vcmp.eq.s32.totalorder %v796_v61, %v812_v3  ;;  %vm372_vm3 = vcmp.eq.s32.totalorder %v815_v4, %v812_v3  ;;  %s664_s28 = scalar_lea.vmem %s508_s27, 16  ;;  %s668_s29 = scalar_lea.vmem %s508_s27, 32 }
  0x34   :  { %560 = vmatprep.mubr.msk.bf16.mxu0 %vm117_vm0, %v89_v18  ;;  %568 = vmatprep.mubr.msk.bf16.mxu1 %vm117_vm0, %v93_v19  ;;  %vm373_vm4 = vcmp.eq.s32.totalorder %v820_v5, %v812_v3  ;;  %vm374_vm5 = vcmp.eq.s32.totalorder %v829_v7, %v812_v3  ;;  %vm375_vm6 = vcmp.eq.s32.totalorder %v837_v10, %v812_v3  ;;  %p665_p2 = scmp.ne.s32.totalorder %s508_s27, %s664_s28  ;;  %p669_p3 = scmp.lt.s32.totalorder %s508_s27, %s508_s27 }
  0x35   :  { %vm376_vm7 = vcmp.eq.s32.totalorder %v844_v14, %v812_v3  ;;  %vm377_vm8 = vcmp.eq.s32.totalorder %v855_v20, %v812_v3  ;;  %p670_p4 = scmp.lt.s32.totalorder %s668_s29, %s664_s28 }
  0x37   :  { %p671_p5 = por %p670_p4, %p669_p3 }
  0x39   :  { %p672_p6 = pnand %p671_p5, %p665_p2 }
  0x3b   :  { %561 = vmatmul.mubr.msk.bf16.gmra.mrb[4].mxu0 %vm117_vm0, %v90_v24  ;;  %569 = vmatmul.mubr.msk.bf16.gmra.mrb[4].mxu1 %vm117_vm0, %v94_v25 }
 0x106   :  { %v558_v27 = vpop.f32.mrb[0].mxu0  ;;  %v566_v28 = vpop.f32.mrb[0].mxu1 }
 0x107   :  { %v176_v29 = vpop.f32.mrb[1].mxu0  ;;  %v208_v30 = vpop.f32.mrb[1].mxu1  ;;  %v185_v41 = vadd.f32 %v558_v27, %v531_v26  ;;  %v217_v53 = vadd.f32 %v566_v28, %v531_v26 }
 0x108   :  { %v559_v31 = vpop.f32.mrb[2].mxu0  ;;  %v177_v32 = vadd.f32 %v531_v26, %v176_v29  ;;  %v567_v33 = vpop.f32.mrb[2].mxu1  ;;  %v209_v51 = vadd.f32 %v531_v26, %v208_v30 }
 0x109   :  { %v179_v34 = vpop.f32.mrb[3].mxu0  ;;  %v211_v35 = vpop.f32.mrb[3].mxu1  ;;  %v188_v46 = vadd.f32 %v559_v31, %v531_v26  ;;  %v220_v54 = vadd.f32 %v567_v33, %v531_v26  ;;  %v872_v31 = vadd.s32 72, %v796_v61 }
 0x10a   :  { %239 = vxpose.xlu0.b32.start [1/16] %v177_v32, 128  ;;  %v180_v36 = vadd.f32 %v531_v26, %v179_v34  ;;  %v212_v52 = vadd.f32 %v531_v26, %v211_v35  ;;  %v880_v35 = vadd.s32 80, %v796_v61 }
 0x10b   :  { %vm379_vm10 = vcmp.eq.s32.totalorder %v872_v31, %v812_v3 }
 0x10c   :  { %vm380_vm11 = vcmp.eq.s32.totalorder %v880_v35, %v812_v3 }
 0x10e   :  { %240 = vxpose.xlu0.b32.cont [2/16] %v180_v36, 128  ;;  %v562_v37 = vpop.f32.mrb[4].mxu0  ;;  %v570_v38 = vpop.f32.mrb[4].mxu1 }
 0x10f   :  { %v192_v39 = vpop.f32.mrb[5].mxu0  ;;  %v224_v40 = vpop.f32.mrb[5].mxu1  ;;  %v201_v49 = vadd.f32 %v562_v37, %v531_v26  ;;  %v233_v57 = vadd.f32 %v570_v38, %v531_v26 }
 0x110   :  { %v563_v42 = vpop.f32.mrb[6].mxu0  ;;  %v571_v43 = vpop.f32.mrb[6].mxu1  ;;  %v193_v47 = vadd.f32 %v531_v26, %v192_v39  ;;  %v225_v55 = vadd.f32 %v531_v26, %v224_v40  ;;  %v888_v39 = vadd.s32 88, %v796_v61 }
 0x111   :  { %v195_v44 = vpop.f32.mrb[7].mxu0  ;;  %v227_v45 = vpop.f32.mrb[7].mxu1  ;;  %v204_v50 = vadd.f32 %v563_v42, %v531_v26  ;;  %v236_v58 = vadd.f32 %v571_v43, %v531_v26  ;;  %v896_v43 = vadd.s32 96, %v796_v61 }
 0x112   :  { %241 = vxpose.xlu0.b32.cont [3/16] %v185_v41, 128  ;;  %v196_v48 = vadd.f32 %v531_v26, %v195_v44  ;;  %v228_v56 = vadd.f32 %v531_v26, %v227_v45  ;;  %v864_v26 = vadd.s32 64, %v796_v61  ;;  %vm381_vm12 = vcmp.eq.s32.totalorder %v888_v39, %v812_v3 }
 0x113   :  { %vm382_vm13 = vcmp.eq.s32.totalorder %v896_v43, %v812_v3 }
 0x114   :  { %vm378_vm9 = vcmp.eq.s32.totalorder %v864_v26, %v812_v3 }
 0x116   :  { %242 = vxpose.xlu0.b32.cont [4/16] %v188_v46, 128 }
 0x11a   :  { %243 = vxpose.xlu0.b32.cont [5/16] %v193_v47, 128  ;;  %v904_v47 = vadd.s32 104, %v796_v61 }
 0x11c   :  { %vm383_vm14 = vcmp.eq.s32.totalorder %v904_v47, %v812_v3 }
 0x11e   :  { %244 = vxpose.xlu0.b32.cont [6/16] %v196_v48, 128 }
 0x122   :  { %245 = vxpose.xlu0.b32.cont [7/16] %v201_v49, 128 }
 0x126   :  { %246 = vxpose.xlu0.b32.cont [8/16] %v204_v50, 128 }
 0x12a   :  { %247 = vxpose.xlu0.b32.cont [9/16] %v209_v51, 128  ;;  %v912_v51 = vadd.s32 112, %v796_v61 }
 0x12c   :  { %vm384_vm15 = vcmp.eq.s32.totalorder %v912_v51, %v812_v3 }
 0x12e   :  { %248 = vxpose.xlu0.b32.cont [10/16] %v212_v52, 128 }
 0x132   :  { %249 = vxpose.xlu0.b32.cont [11/16] %v217_v53, 128 }
 0x136   :  { %250 = vxpose.xlu0.b32.cont [12/16] %v220_v54, 128 }
 0x13a   :  { %251 = vxpose.xlu0.b32.cont [13/16] %v225_v55, 128  ;;  %v920_v55 = vadd.s32 120, %v796_v61 }
 0x13c   :  { %vm385_vm0 = vcmp.eq.s32.totalorder %v920_v55, %v812_v3 }
 0x13e   :  { %252 = vxpose.xlu0.b32.cont [14/16] %v228_v56, 128 }
 0x142   :  { %253 = vxpose.xlu0.b32.cont [15/16] %v233_v57, 128 }
 0x146   :  { %254 = vxpose.xlu0.b32.end [16/16] %v236_v58, 128 }
 0x18a   :  { %v794_v60 = vpop.trf.xlu0 }
 0x18b   :  { %v386_v11 = vsel %vm370_vm2, %v794_v60, 0.0 }
 0x18e   :  { %v798_v62 = vpop.trf.xlu0 }
 0x18f   :  { %v387_v8 = vsel %vm371_vm1, %v798_v62, 0.0 }
 0x190   :  { %v402_v13 = vadd.f32 %v387_v8, %v386_v11 }
 0x192   :  { %v809_v2 = vpop.trf.xlu0 }
 0x193   :  { %v388_v12 = vsel %vm372_vm3, %v809_v2, 0.0 }
 0x194   :  { %v403_v16 = vadd.f32 %v402_v13, %v388_v12 }
 0x196   :  { %v822_v6 = vpop.trf.xlu0 }
 0x197   :  { %v389_v15 = vsel %vm373_vm4, %v822_v6, 0.0 }
 0x198   :  { %v404_v19 = vadd.f32 %v403_v16, %v389_v15 }
 0x19a   :  { %v834_v9 = vpop.trf.xlu0 }
 0x19b   :  { %v390_v18 = vsel %vm374_vm5, %v834_v9, 0.0  ;;  %v273_v57 = vmax.f32 %v794_v60, %v834_v9 }
 0x19c   :  { %v405_v22 = vadd.f32 %v404_v19, %v390_v18 }
 0x19e   :  { %v847_v17 = vpop.trf.xlu0 }
 0x19f   :  { %v391_v21 = vsel %vm375_vm6, %v847_v17, 0.0  ;;  %v274_v56 = vmax.f32 %v798_v62, %v847_v17 }
 0x1a0   :  { %v406_v25 = vadd.f32 %v405_v22, %v391_v21 }
 0x1a2   :  { %v858_v23 = vpop.trf.xlu0 }
 0x1a3   :  { %v392_v24 = vsel %vm376_vm7, %v858_v23, 0.0  ;;  %v275_v59 = vmax.f32 %v809_v2, %v858_v23 }
 0x1a4   :  { %v407_v27 = vadd.f32 %v406_v25, %v392_v24 }
 0x1a6   :  { %v866_v28 = vpop.trf.xlu0 }
 0x1a7   :  { %v393_v29 = vsel %vm377_vm8, %v866_v28, 0.0  ;;  %v276_v63 = vmax.f32 %v822_v6, %v866_v28 }
 0x1a8   :  { %v408_v30 = vadd.f32 %v407_v27, %v393_v29 }
 0x1aa   :  { %v874_v32 = vpop.trf.xlu0 }
 0x1ab   :  { %v394_v33 = vsel %vm378_vm9, %v874_v32, 0.0  ;;  %v277_v13 = vmax.f32 %v273_v57, %v874_v32 }
 0x1ac   :  { %v409_v34 = vadd.f32 %v408_v30, %v394_v33 }
 0x1ae   :  { %v882_v36 = vpop.trf.xlu0 }
 0x1af   :  { %v395_v37 = vsel %vm379_vm10, %v882_v36, 0.0  ;;  %v278_v8 = vmax.f32 %v274_v56, %v882_v36 }
 0x1b0   :  { %v410_v38 = vadd.f32 %v409_v34, %v395_v37 }
 0x1b2   :  { %v890_v40 = vpop.trf.xlu0 }
 0x1b3   :  { %v396_v41 = vsel %vm380_vm11, %v890_v40, 0.0  ;;  %v279_v15 = vmax.f32 %v275_v59, %v890_v40 }
 0x1b4   :  { %v411_v42 = vadd.f32 %v410_v38, %v396_v41 }
 0x1b6   :  { %v898_v44 = vpop.trf.xlu0 }
 0x1b7   :  { %v397_v45 = vsel %vm381_vm12, %v898_v44, 0.0  ;;  %v280_v18 = vmax.f32 %v276_v63, %v898_v44 }
 0x1b8   :  { %v412_v46 = vadd.f32 %v411_v42, %v397_v45 }
 0x1ba   :  { %v906_v48 = vpop.trf.xlu0 }
 0x1bb   :  { %v398_v49 = vsel %vm382_vm13, %v906_v48, 0.0  ;;  %v281_v21 = vmax.f32 %v277_v13, %v906_v48 }
 0x1bc   :  { %v413_v50 = vadd.f32 %v412_v46, %v398_v49 }
 0x1be   :  { %v914_v52 = vpop.trf.xlu0 }
 0x1bf   :  { %v399_v53 = vsel %vm383_vm14, %v914_v52, 0.0  ;;  %v282_v16 = vmax.f32 %v278_v8, %v914_v52 }
 0x1c0   :  { %v414_v54 = vadd.f32 %v413_v50, %v399_v53 }
 0x1c1   :  { %v285_v27 = vmax.f32 %v281_v21, %v282_v16 }
 0x1c2   :  { %v926_v58 = vpop.trf.xlu0 }
 0x1c3   :  { %v400_v11 = vsel %vm384_vm15, %v926_v58, 0.0  ;;  %v283_v22 = vmax.f32 %v279_v15, %v926_v58 }
 0x1c4   :  { %v415_v12 = vadd.f32 %v414_v54, %v400_v11 }
 0x1c6   :  { %v940_v19 = vpop.trf.xlu0 }
 0x1c7   :  { %v284_v24 = vmax.f32 %v280_v18, %v940_v19  ;;  %v401_v25 = vsel %vm385_vm0, %v940_v19, 0.0 }
 0x1c8   :  { %v946_v3 = vadd.f32 %v415_v12, %v401_v25 }
 0x1c9   :  { %v286_v29 = vmax.f32 %v283_v22, %v284_v24 }
 0x1cb   :  { %v287_v30 = vmax.f32 %v285_v27, %v286_v29 }
 0x1cd   :  { %v288_v33 = vrot.slane %v287_v30, 4 }
 0x1cf   :  { %v289_v34 = vmax.f32 %v287_v30, %v288_v33 }
 0x1d1   :  { %v290_v37 = vrot.slane %v289_v34, 2 }
 0x1d3   :  { %v291_v38 = vmax.f32 %v289_v34, %v290_v37 }
 0x1d5   :  { %v292_v41 = vrot.slane %v291_v38, 1 }
 0x1d7   :  { %v948_v42 = vmax.f32 %v291_v38, %v292_v41 }
 0x1d9   :  { %v294_v45 = vsub.f32 %v794_v60, %v948_v42  ;;  %v295_v46 = vsub.f32 %v798_v62, %v948_v42  ;;  %v296_v49 = vsub.f32 %v809_v2, %v948_v42  ;;  %v297_v50 = vsub.f32 %v822_v6, %v948_v42 }
 0x1da   :  { %v298_v53 = vsub.f32 %v834_v9, %v948_v42  ;;  %v299_v54 = vsub.f32 %v847_v17, %v948_v42  ;;  %v300_v56 = vsub.f32 %v858_v23, %v948_v42  ;;  %v301_v57 = vsub.f32 %v866_v28, %v948_v42 }
 0x1db   :  { %v302_v59 = vsub.f32 %v874_v32, %v948_v42  ;;  %v303_v63 = vsub.f32 %v882_v36, %v948_v42  ;;  %v310_v8 = vmul.f32 1.442695, %v294_v45  ;;  %v312_v11 = vmul.f32 1.442695, %v295_v46 }
 0x1dc   :  { %v304_v12 = vsub.f32 %v890_v40, %v948_v42  ;;  %v305_v13 = vsub.f32 %v898_v44, %v948_v42  ;;  %v306_v15 = vsub.f32 %v906_v48, %v948_v42  ;;  %v314_v16 = vmul.f32 1.442695, %v296_v49 }
 0x1dd   :  { %v307_v18 = vsub.f32 %v914_v52, %v948_v42  ;;  %v308_v21 = vsub.f32 %v926_v58, %v948_v42  ;;  %586 = vpow2.f32 %v310_v8  ;;  %v316_v22 = vmul.f32 1.442695, %v297_v50 }
 0x1de   :  { %v309_v24 = vsub.f32 %v940_v19, %v948_v42  ;;  %588 = vpow2.f32 %v312_v11  ;;  %v318_v25 = vmul.f32 1.442695, %v298_v53  ;;  %vm429_vm1 = vcmp.eq.f32.partialorder %v794_v60, %v948_v42 }
 0x1df   :  { %v320_v27 = vmul.f32 1.442695, %v299_v54  ;;  %v322_v29 = vmul.f32 1.442695, %v300_v56  ;;  %v324_v30 = vmul.f32 1.442695, %v301_v57  ;;  %vm430_vm2 = vcmp.eq.f32.partialorder %v798_v62, %v948_v42 }
 0x1e0   :  { %590 = vpow2.f32 %v314_v16  ;;  %v326_v33 = vmul.f32 1.442695, %v302_v59  ;;  %v328_v34 = vmul.f32 1.442695, %v303_v63  ;;  %v330_v37 = vmul.f32 1.442695, %v304_v12 }
 0x1e1   :  { %592 = vpow2.f32 %v316_v22  ;;  %v986_v38 = vmul.f32 1.442695, %v305_v13  ;;  %v988_v41 = vmul.f32 1.442695, %v306_v15  ;;  %vm431_vm3 = vcmp.eq.f32.partialorder %v809_v2, %v948_v42 }
 0x1e2   :  { %594 = vpow2.f32 %v318_v25  ;;  %vm432_vm4 = vcmp.eq.f32.partialorder %v822_v6, %v948_v42  ;;  %vm433_vm5 = vcmp.eq.f32.partialorder %v834_v9, %v948_v42  ;;  %vm434_vm6 = vcmp.eq.f32.partialorder %v847_v17, %v948_v42 }
 0x1e3   :  { %596 = vpow2.f32 %v320_v27  ;;  %vm435_vm7 = vcmp.eq.f32.partialorder %v858_v23, %v948_v42  ;;  %vm436_vm8 = vcmp.eq.f32.partialorder %v866_v28, %v948_v42  ;;  %vm437_vm9 = vcmp.eq.f32.partialorder %v874_v32, %v948_v42 }
 0x1e4   :  { %598 = vpow2.f32 %v322_v29  ;;  %vm438_vm10 = vcmp.eq.f32.partialorder %v882_v36, %v948_v42  ;;  %vm439_vm11 = vcmp.eq.f32.partialorder %v890_v40, %v948_v42  ;;  %vm440_vm12 = vcmp.eq.f32.partialorder %v898_v44, %v948_v42 }
 0x1e5   :  { %600 = vpow2.f32 %v324_v30  ;;  %vm441_vm13 = vcmp.eq.f32.partialorder %v906_v48, %v948_v42  ;;  %vm442_vm14 = vcmp.eq.f32.partialorder %v914_v52, %v948_v42  ;;  %vm443_vm15 = vcmp.eq.f32.partialorder %v926_v58, %v948_v42 }
 0x1e6   :  { %602 = vpow2.f32 %v326_v33  ;;  %vm444_vm0 = vcmp.eq.f32.partialorder %v940_v19, %v948_v42  ;;  %v445_v45 = vsel %vm429_vm1, %v796_v61, 128  ;;  %v446_v46 = vsel %vm430_vm2, %v807_v1, 128 }
 0x1e7   :  { %v587_v49 = vpop.eup %586  ;;  %604 = vpow2.f32 %v328_v34  ;;  %v447_v50 = vsel %vm431_vm3, %v815_v4, 128  ;;  %v448_v53 = vsel %vm432_vm4, %v820_v5, 128  ;;  %v449_v60 = vsel %vm433_vm5, %v829_v7, 128 }
 0x1e8   :  { %v589_v61 = vpop.eup %588  ;;  %606 = vpow2.f32 %v330_v37  ;;  %v450_v62 = vsel %vm434_vm6, %v837_v10, 128  ;;  %v451_v1 = vsel %vm435_vm7, %v844_v14, 128  ;;  %v452_v2 = vsel %vm436_vm8, %v855_v20, 128 }
 0x1e9   :  { %v342_v4 = vadd.f32 %v589_v61, %v587_v49  ;;  %v453_v5 = vsel %vm437_vm9, %v864_v26, 128  ;;  %v454_v6 = vsel %vm438_vm10, %v872_v31, 128  ;;  %v455_v7 = vsel %vm439_vm11, %v880_v35, 128 }
 0x1ea   :  { %v591_v9 = vpop.eup %590  ;;  %v456_v10 = vsel %vm440_vm12, %v888_v39, 128  ;;  %v457_v14 = vsel %vm441_vm13, %v896_v43, 128  ;;  %v458_v17 = vsel %vm442_vm14, %v904_v47, 128  ;;  %vm461_vm1 = vcmp.lt.s32.totalorder %v445_v45, %v449_v60 }
 0x1eb   :  { %v593_v20 = vpop.eup %592  ;;  %v343_v23 = vadd.f32 %v591_v9, %v342_v4  ;;  %v459_v26 = vsel %vm443_vm15, %v912_v51, 128  ;;  %v462_v28 = vsel %vm461_vm1, %v445_v45, %v449_v60  ;;  %vm463_vm2 = vcmp.lt.s32.totalorder %v446_v46, %v450_v62 }
 0x1ec   :  { %v595_v31 = vpop.eup %594  ;;  %v460_v32 = vsel %vm444_vm0, %v920_v55, 128  ;;  %v464_v35 = vsel %vm463_vm2, %v446_v46, %v450_v62  ;;  %vm465_vm3 = vcmp.lt.s32.totalorder %v447_v50, %v451_v1  ;;  %vm467_vm4 = vcmp.lt.s32.totalorder %v448_v53, %v452_v2 }
 0x1ed   :  { %v597_v36 = vpop.eup %596  ;;  %v344_v39 = vadd.f32 %v593_v20, %v343_v23  ;;  %v466_v40 = vsel %vm465_vm3, %v447_v50, %v451_v1  ;;  %v468_v43 = vsel %vm467_vm4, %v448_v53, %v452_v2  ;;  %vm469_vm5 = vcmp.lt.s32.totalorder %v462_v28, %v453_v5 }
 0x1ee   :  { %v599_v44 = vpop.eup %598  ;;  %v470_v47 = vsel %vm469_vm5, %v462_v28, %v453_v5  ;;  %vm471_vm6 = vcmp.lt.s32.totalorder %v464_v35, %v454_v6  ;;  %vm473_vm7 = vcmp.lt.s32.totalorder %v466_v40, %v455_v7  ;;  %vm475_vm8 = vcmp.lt.s32.totalorder %v468_v43, %v456_v10 }
 0x1ef   :  { %v601_v48 = vpop.eup %600  ;;  %v345_v51 = vadd.f32 %v595_v31, %v344_v39  ;;  %v472_v54 = vsel %vm471_vm6, %v464_v35, %v454_v6  ;;  %v474_v56 = vsel %vm473_vm7, %v466_v40, %v455_v7  ;;  %v476_v57 = vsel %vm475_vm8, %v468_v43, %v456_v10 }
 0x1f0   :  { %v603_v59 = vpop.eup %602  ;;  %vm477_vm9 = vcmp.lt.s32.totalorder %v470_v47, %v457_v14  ;;  %vm479_vm10 = vcmp.lt.s32.totalorder %v472_v54, %v458_v17  ;;  %vm481_vm11 = vcmp.lt.s32.totalorder %v474_v56, %v459_v26  ;;  %vm483_vm12 = vcmp.lt.s32.totalorder %v476_v57, %v460_v32 }
 0x1f1   :  { %v605_v55 = vpop.eup %604  ;;  %v346_v63 = vadd.f32 %v597_v36, %v345_v51  ;;  %v478_v8 = vsel %vm477_vm9, %v470_v47, %v457_v14  ;;  %v480_v11 = vsel %vm479_vm10, %v472_v54, %v458_v17  ;;  %v482_v12 = vsel %vm481_vm11, %v474_v56, %v459_v26 }
 0x1f2   :  { %v607_v13 = vpop.eup %606  ;;  %608 = vpow2.f32 %v986_v38  ;;  %v336_v15 = vmul.f32 1.442695, %v307_v18  ;;  %v484_v16 = vsel %vm483_vm12, %v476_v57, %v460_v32  ;;  %vm485_vm13 = vcmp.lt.s32.totalorder %v478_v8, %v480_v11 }
 0x1f3   :  { %v347_v22 = vadd.f32 %v599_v44, %v346_v63  ;;  %v486_v25 = vsel %vm485_vm13, %v478_v8, %v480_v11  ;;  %vm487_vm14 = vcmp.lt.s32.totalorder %v482_v12, %v484_v16  ;;  %610 = vpow2.f32 %v988_v41 }
 0x1f4   :  { %v338_v27 = vmul.f32 1.442695, %v308_v21  ;;  %v488_v29 = vsel %vm487_vm14, %v482_v12, %v484_v16  ;;  %612 = vpow2.f32 %v336_v15  ;;  %v340_v52 = vmul.f32 1.442695, %v309_v24 }
 0x1f5   :  { %v348_v30 = vadd.f32 %v601_v48, %v347_v22  ;;  %vm489_vm15 = vcmp.lt.s32.totalorder %v486_v25, %v488_v29 }
 0x1f6   :  { %v490_v18 = vsel %vm489_vm15, %v486_v25, %v488_v29  ;;  %614 = vpow2.f32 %v338_v27 }
 0x1f7   :  { %v349_v33 = vadd.f32 %v603_v59, %v348_v30  ;;  %v491_v34 = vrot.slane %v490_v18, 4  ;;  %616 = vpow2.f32 %v340_v52 }
 0x1f9   :  { %v350_v37 = vadd.f32 %v605_v55, %v349_v33  ;;  %vm492_vm0 = vcmp.lt.s32.totalorder %v490_v18, %v491_v34 }
 0x1fa   :  { %v493_v38 = vsel %vm492_vm0, %v490_v18, %v491_v34 }
 0x1fb   :  { %v351_v41 = vadd.f32 %v607_v13, %v350_v37  ;;  %v494_v45 = vrot.slane %v493_v38, 2 }
 0x1fc   :  { %v609_v58 = vpop.eup %608 }
 0x1fd   :  { %v352_v21 = vadd.f32 %v609_v58, %v351_v41  ;;  %vm495_vm1 = vcmp.lt.s32.totalorder %v493_v38, %v494_v45  ;;  %v611_v46 = vpop.eup %610 }
 0x1fe   :  { %v496_v49 = vsel %vm495_vm1, %v493_v38, %v494_v45  ;;  %v613_v24 = vpop.eup %612 }
 0x1ff   :  { %v353_v50 = vadd.f32 %v611_v46, %v352_v21  ;;  %v497_v19 = vrot.slane %v496_v49, 1 }
 0x200   :  { %v615_v60 = vpop.eup %614 }
 0x201   :  { %v354_v53 = vadd.f32 %v613_v24, %v353_v50  ;;  %vm498_vm2 = vcmp.lt.s32.totalorder %v496_v49, %v497_v19  ;;  %v617_v1 = vpop.eup %616 }
 0x202   :  { %v499_v61 = vsel %vm498_vm2, %v496_v49, %v497_v19 }
 0x203   :  { %v355_v62 = vadd.f32 %v615_v60, %v354_v53  ;;  %500 = vst [vmem:[#allocation7] sm:$0x1] %v499_v61 }
 0x204   :  { %675 = shalt.err (!%p672_p6)
}
 0x205   :  { %s676_s8 = scalar_lea.hbm %s1129_s5, 16 }
 0x206   :  { %p677_p7 = scmp.ne.s32.totalorder %s1129_s5, %s676_s8  ;;  %p680_p8 = scmp.lt.u32.totalorder %s676_s8, %s1129_s5 }
 0x208   :  { %p682_p9 = pnand %p680_p8, %p677_p7 }
 0x20a   :  { %685 = shalt.err (!%p682_p9)
}
 0x20b   :  { %510 = dma.vmem_to_hbm [thread:$0]  %s508_s27, 16, %s1129_s5, [#allocation4]   ;;  %v356_v2 = vadd.f32 %v617_v1, %v355_v62  ;;  %v417_v7 = vrot.slane %v946_v3, 4  ;;  %v272_v26 = vld [vmem:[%s1128_s4] sm:$0x1]  ;;  %vm425_vm4 = vcmp.ne.s32.totalorder %v804_v0, 4294967196 }
 0x20c   :  { %vm424_vm3 = vcmp.eq.s32.totalorder %v272_v26, 1  ;;  %s723_s5 = smov [#allocation8]  }
 0x20d   :  { %v357_v4 = vrot.slane %v356_v2, 4  ;;  %v418_v14 = vadd.f32 %v417_v7, %v946_v3  ;;  %s517_s17 = sshll.u32 %s723_s5, 4  ;;  %vm426_vm5 = vmand %vm424_vm3, %vm425_vm4  ;;  %s518_s17 = int_to_ptr.vmem [resolvable:$true] %s517_s17 }
 0x20e   :  { %s686_s18 = scalar_lea.vmem %s518_s17, 16  ;;  %s690_s19 = scalar_lea.vmem %s518_s17, 32 }
 0x20f   :  { %v358_v5 = vadd.f32 %v357_v4, %v356_v2  ;;  %v419_v20 = vrot.slane %v418_v14, 2  ;;  %p687_p10 = scmp.ne.s32.totalorder %s518_s17, %s686_s18  ;;  %p691_p11 = scmp.lt.s32.totalorder %s518_s17, %s518_s17 }
 0x210   :  { %p692_p12 = scmp.lt.s32.totalorder %s690_s19, %s686_s18 }
 0x211   :  { %v359_v6 = vrot.slane %v358_v5, 2  ;;  %v420_v23 = vadd.f32 %v419_v20, %v418_v14 }
 0x212   :  { %p693_p13 = por %p692_p12, %p691_p11 }
 0x213   :  { %v360_v9 = vadd.f32 %v359_v6, %v358_v5  ;;  %v421_v28 = vrot.slane %v420_v23, 1 }
 0x214   :  { %p694_p0 = pnand %p693_p13, %p687_p10 }
 0x215   :  { %v361_v10 = vrot.slane %v360_v9, 1  ;;  %v422_v36 = vadd.f32 %v421_v28, %v420_v23 }
 0x217   :  { %v362_v17 = vadd.f32 %v361_v10, %v360_v9 }
 0x219   :  { %618 = vlog2.f32 %v362_v17 }
 0x223   :  { %v619_v31 = vpop.eup %618 }
 0x224   :  { %v364_v32 = vmul.f32 0.6931472, %v619_v31 }
 0x226   :  { %v365_v35 = vadd.f32 %v364_v32, %v948_v42 }
 0x228   :  { %v423_v3 = vsub.f32 %v365_v35, %v422_v36 }
 0x22a   :  { %v427_v39 = vsel %vm426_vm5, %v423_v3, 0.0 }
 0x22b   :  { %428 = vst [vmem:[#allocation8] sm:$0x1] %v427_v39 }
 0x22c   :  { %697 = shalt.err (!%p694_p0)
}
 0x22d   :  { %s698_s21 = scalar_lea.hbm %s1130_s6, 16 }
 0x22e   :  { %p699_p1 = scmp.ne.s32.totalorder %s1130_s6, %s698_s21  ;;  %p702_p2 = scmp.lt.u32.totalorder %s698_s21, %s1130_s6 }
 0x230   :  { %p704_p3 = pnand %p702_p2, %p699_p1 }
 0x232   :  { %707 = shalt.err (!%p704_p3)
}
 0x233   :  { %520 = dma.vmem_to_hbm [thread:$0]  %s518_s17, 16, %s1130_s6, [#allocation9]  }
 0x234   :  { %712 = dma.done.wait [#allocation4], 16  }
 0x235   :  { %713 = vsyncadd [#allocation4], 4294967280 }
 0x236   :  { %714 = dma.done.wait [#allocation9], 16  }
 0x237   :  { %715 = vsyncadd [#allocation9], 4294967280 }
 0x238   :  { %527 = vsyncpa [#allocation3], 1 }
 0x239   :  { %528 = vsyncpa [#allocation6], 1 }
 0x23a   :  { %529 = vsyncpa [#allocation4], 1 }
 0x23b   :  { %530 = vsyncpa [#allocation9], 1 }

</bundles_post_ra>
